<compile_context>
chip_gen: v5e
topology: v5e:2x2
jax: 0.10.0
libtpu: 0.0.40
codegen_flags: <defaults>
</compile_context>

<pallas_src>
import jax
import jax.numpy as jnp
from jax.experimental import pallas as pl
from jax.experimental.pallas import tpu as pltpu

NUM_NODES = 21
NODE_F_IN = 4
NODE_F_OUT = 4

EDGE_SRC = (0, 1, 2, 3, 4, 3, 2, 1, 0, 5, 6, 7, 8, 7, 6, 5, 0, 9, 10, 11,
            12, 11, 10, 9, 0, 13, 14, 15, 16, 15, 14, 13, 0, 17, 18, 19, 20, 19, 18, 17)
EDGE_DST = (1, 2, 3, 4, 3, 2, 1, 0, 5, 6, 7, 8, 7, 6, 5, 0, 9, 10, 11, 12,
            11, 10, 9, 0, 13, 14, 15, 16, 15, 14, 13, 0, 17, 18, 19, 20, 19, 18, 17, 0)


def cheb_laplacian_dense():
    """L_hat = -(D^-1/2 A D^-1/2): PyG ChebConv norm with 'sym', lambda_max=2.0."""
    src = jnp.array(EDGE_SRC, dtype=jnp.int32)
    dst = jnp.array(EDGE_DST, dtype=jnp.int32)
    A = jnp.zeros((NUM_NODES, NUM_NODES), jnp.float32).at[src, dst].add(1.0)
    deg = A.sum(axis=1)
    d_inv_sqrt = jnp.where(deg > 0, 1.0 / jnp.sqrt(deg), 0.0)
    return -(d_inv_sqrt[:, None] * A * d_inv_sqrt[None, :])


# ----------------------------------------------------------------------------- kernel
def gcn_lstm_kernel(mask_ref, x_ref, wxf_ref, whc_ref, bf_ref, wfc_ref, bfc_ref,
                    out_ref):
    # mask_ref: (T,) int32 SMEM   1 => frame t is NOT all-zero (step runs)
    # x_ref   : (T*B, D)          time-major flattened node features
    # wxf_ref : (D, 4H)           ChebConv folded into concatenated gate input weights
    # whc_ref : (H, 4H)           concatenated gate hidden weights (gate order f,i,o,C)
    # bf_ref  : (1, 4H)           folded gate bias
    # wfc_ref : (H, C)  bfc_ref: (1, C)
    T = mask_ref.shape[0]
    TB, _ = x_ref.shape
    B = TB // T
    H = whc_ref.shape[0]

    whc = whc_ref[...]

    # Hoisted input projection: one MXU call covers every timestep; bias added once.
    xproj = (jnp.dot(x_ref[...], wxf_ref[...], preferred_element_type=jnp.float32)
             + bf_ref[...])                                           # (T*B, 4H)

    h = jnp.zeros((B, H), jnp.float32)
    c = jnp.zeros((B, H), jnp.float32)

    for t in range(T):                                                # static unroll
        gates = xproj[t * B:(t + 1) * B, :] + jnp.dot(
            h, whc, preferred_element_type=jnp.float32)               # (B, 4H)
        f = jax.nn.sigmoid(gates[:, 0 * H:1 * H])
        i = jax.nn.sigmoid(gates[:, 1 * H:2 * H])
        o = jax.nn.sigmoid(gates[:, 2 * H:3 * H])
        g = jnp.tanh(gates[:, 3 * H:4 * H])
        c_new = f * c + i * g
        h_new = o * jnp.tanh(c_new)
        # torch `continue` on an all-zero frame -> masked state update (scalar read)
        upd = mask_ref[t] != 0
        h = jnp.where(upd, h_new, h)
        c = jnp.where(upd, c_new, c)

    logits = jnp.dot(h, wfc_ref[...], preferred_element_type=jnp.float32) + bfc_ref[...]
    m = jnp.max(logits, axis=1, keepdims=True)
    e = jnp.exp(logits - m)
    out_ref[...] = e / jnp.sum(e, axis=1, keepdims=True)


# ----------------------------------------------------------------------------- param prep (one-time)
def prepare_folded_params(params):
    """Fold ChebConv + gate concatenation into MXU-friendly operators (done once)."""
    L = cheb_laplacian_dense()                              # (N, N)
    eye_f = jnp.eye(NODE_F_IN, dtype=jnp.float32)
    eye_n = jnp.eye(NUM_NODES, dtype=jnp.float32)
    lk = jnp.kron(L.T, eye_f)                               # (D, D) Laplacian propagation
    w0k = jnp.kron(eye_n, params["w0"])                     # (D, D)
    w1k = jnp.kron(eye_n, params["w1"])                     # (D, D)
    w_cheb = w0k + lk @ w1k                                 # step_in = frame @ w_cheb + bck
    bck = jnp.tile(params["bc"], (1, NUM_NODES))            # (1, D)

    wx_cat = jnp.concatenate([params["wx"][k] for k in range(4)], axis=1)  # (D, 4H)
    wh_cat = jnp.concatenate([params["wh"][k] for k in range(4)], axis=1)  # (H, 4H)
    bg_cat = jnp.concatenate([params["bg"][k] for k in range(4)], axis=1)  # (1, 4H)

    return {
        "wxf": w_cheb @ wx_cat,                 # (D, 4H)  GCN folded into gate inputs
        "whc": wh_cat,                          # (H, 4H)
        "bf": bck @ wx_cat + bg_cat,            # (1, 4H)
        "wfc": params["wfc"],                   # (H, C)
        "bfc": params["bfc"],                   # (1, C)
    }


# ----------------------------------------------------------------------------- wrapper
def gcn_lstm_classifier(inputs, folded):
    """inputs: (B, T, NUM_NODES*NODE_F_IN) float32 (PyTorch layout). folded: see above."""
    B, T, D = inputs.shape
    assert D == NUM_NODES * NODE_F_IN
    C = folded["wfc"].shape[1]

    # time-major flattened frames: row t*B + b  ==  frame t of batch element b
    x2 = jnp.transpose(inputs, (1, 0, 2)).reshape(T * B, D)
    # per-timestep "frame is not all-zero" mask (scalar per step, lives in SMEM)
    mask = jnp.any(inputs != 0.0, axis=(0, 2)).astype(jnp.int32)      # (T,)

    args = (mask, x2, folded["wxf"], folded["whc"], folded["bf"],
            folded["wfc"], folded["bfc"])
    in_specs = ([pl.BlockSpec(memory_space=pltpu.MemorySpace.SMEM)]
                + [pl.BlockSpec(memory_space=pltpu.MemorySpace.VMEM)] * (len(args) - 1))

    return pl.pallas_call(
        gcn_lstm_kernel,
        out_shape=jax.ShapeDtypeStruct((B, C), jnp.float32),
        in_specs=in_specs,
        out_specs=pl.BlockSpec(memory_space=pltpu.MemorySpace.VMEM),
    )(*args)


# ----------------------------------------------------------------------------- params / reference
def make_params(key, input_size, hidden_size, output_classes):
    ks = jax.random.split(key, 8)
    u = lambda k, shape, s: jax.random.uniform(k, shape, jnp.float32, -s, s)
    s_cheb = 1.0 / (NODE_F_IN ** 0.5)
    s_gate = 1.0 / ((input_size + hidden_size) ** 0.5)
    s_fc = 1.0 / (hidden_size ** 0.5)
    return {
        "w0": u(ks[0], (NODE_F_IN, NODE_F_OUT), s_cheb),       # Theta_0 (in, out)
        "w1": u(ks[1], (NODE_F_IN, NODE_F_OUT), s_cheb),       # Theta_1 (in, out)
        "bc": u(ks[2], (1, NODE_F_OUT), s_cheb),               # ChebConv bias
        "wx": u(ks[3], (4, input_size, hidden_size), s_gate),  # gate weights (input part)
        "wh": u(ks[4], (4, hidden_size, hidden_size), s_gate), # gate weights (hidden part)
        "bg": u(ks[5], (4, 1, hidden_size), s_gate),           # gate biases
        "wfc": u(ks[6], (hidden_size, output_classes), s_fc),
        "bfc": u(ks[7], (1, output_classes), s_fc),
    }


def reference_forward(inputs, params):
    """Pure-JAX mirror of the PyTorch forward (output_last=True), unfolded."""
    B, T, D = inputs.shape
    L = cheb_laplacian_dense()
    H = params["wh"].shape[1]
    h = jnp.zeros((B, H), jnp.float32)
    c = jnp.zeros((B, H), jnp.float32)
    for t in range(T):
        frame = inputs[:, t, :]
        if bool(jnp.all(frame == 0)):
            continue
        node = frame.reshape(B, NUM_NODES, NODE_F_IN)
        tx1 = jnp.einsum("ij,bjf->bif", L, node)
        og = node @ params["w0"] + tx1 @ params["w1"] + params["bc"][0]
        step_in = og.reshape(B, NUM_NODES * NODE_F_OUT)
        gs = [step_in @ params["wx"][k] + h @ params["wh"][k] + params["bg"][k]
              for k in range(4)]
        f, i, o = jax.nn.sigmoid(gs[0]), jax.nn.sigmoid(gs[1]), jax.nn.sigmoid(gs[2])
        g = jnp.tanh(gs[3])
        c = f * c + i * g
        h = o * jnp.tanh(c)
    logits = h @ params["wfc"] + params["bfc"]
    return jax.nn.softmax(logits, axis=1)


if __name__ == "__main__":
    key = jax.random.PRNGKey(0)
    B, T = 2, 8
    input_size = NUM_NODES * NODE_F_IN          # 84
    hidden_size = 32                            # cell_size == hidden_size in initHidden
    output_classes = 3

    k_in, k_p = jax.random.split(key)
    inputs = jax.random.normal(k_in, (B, T, input_size), jnp.float32)
    inputs = inputs.at[:, 3, :].set(0.0)        # exercise the all-zero-frame skip

    params = make_params(k_p, input_size, hidden_size, output_classes)
    folded = prepare_folded_params(params)      # one-time weight folding (not per call)

    fwd = jax.jit(gcn_lstm_classifier)
    out = jax.block_until_ready(fwd(inputs, folded))
    ref = reference_forward(inputs, params)

    assert out.shape == (B, output_classes)
    assert bool(jnp.all(jnp.isfinite(out)))
    assert bool(jnp.allclose(jnp.sum(out, axis=1), 1.0, atol=1e-4))
    assert bool(jnp.allclose(out, ref, rtol=2e-2, atol=2e-3))
    print("KERNEL_OK")
</pallas_src>

<mosaic_0001>
module attributes {stable_mosaic.version = 11 : i64} {
  func.func @gcn_lstm_kernel(%arg0: memref<8xi32, #tpu.memory_space<smem>>, %arg1: memref<16x84xf32, #tpu.memory_space<vmem>>, %arg2: memref<84x128xf32, #tpu.memory_space<vmem>>, %arg3: memref<32x128xf32, #tpu.memory_space<vmem>>, %arg4: memref<1x128xf32, #tpu.memory_space<vmem>>, %arg5: memref<32x3xf32, #tpu.memory_space<vmem>>, %arg6: memref<1x3xf32, #tpu.memory_space<vmem>>, %arg7: memref<2x3xf32, #tpu.memory_space<vmem>>) attributes {dimension_semantics = [], scalar_prefetch = 0 : i64, scratch_operands = 0 : i64, tpu.core_type = #tpu.core_type<tc>} {
    %c0 = arith.constant 0 : index
    %c0_0 = arith.constant 0 : index
    %0 = vector.load %arg3[%c0, %c0_0] : memref<32x128xf32, #tpu.memory_space<vmem>>, vector<32x128xf32>
    %c0_1 = arith.constant 0 : index
    %c0_2 = arith.constant 0 : index
    %1 = vector.load %arg1[%c0_1, %c0_2] : memref<16x84xf32, #tpu.memory_space<vmem>>, vector<16x84xf32>
    %c0_3 = arith.constant 0 : index
    %c0_4 = arith.constant 0 : index
    %2 = vector.load %arg2[%c0_3, %c0_4] : memref<84x128xf32, #tpu.memory_space<vmem>>, vector<84x128xf32>
    %cst = arith.constant dense<0.000000e+00> : vector<16x128xf32>
    %3 = tpu.matmul %1, %2, %cst {dimension_numbers = #tpu.dot_dimension_numbers<[1], [0], [0], [1], [0, 0, 1, 1], [], []>} : vector<16x84xf32>, vector<84x128xf32>, vector<16x128xf32> -> vector<16x128xf32>
    %c0_5 = arith.constant 0 : index
    %c0_6 = arith.constant 0 : index
    %4 = vector.load %arg4[%c0_5, %c0_6] : memref<1x128xf32, #tpu.memory_space<vmem>>, vector<1x128xf32>
    %5 = vector.broadcast %4 : vector<1x128xf32> to vector<16x128xf32>
    %6 = arith.addf %3, %5 : vector<16x128xf32>
    %cst_7 = arith.constant 0.000000e+00 : f32
    %7 = vector.broadcast %cst_7 : f32 to vector<2x32xf32>
    %cst_8 = arith.constant 0.000000e+00 : f32
    %8 = vector.broadcast %cst_8 : f32 to vector<2x32xf32>
    %9 = vector.extract_strided_slice %6 {offsets = [0, 0], sizes = [2, 128], strides = [1, 1]} : vector<16x128xf32> to vector<2x128xf32>
    %cst_9 = arith.constant dense<0.000000e+00> : vector<2x128xf32>
    %10 = tpu.matmul %7, %0, %cst_9 {dimension_numbers = #tpu.dot_dimension_numbers<[1], [0], [0], [1], [0, 0, 1, 1], [], []>} : vector<2x32xf32>, vector<32x128xf32>, vector<2x128xf32> -> vector<2x128xf32>
    %11 = arith.addf %9, %10 : vector<2x128xf32>
    %12 = vector.extract_strided_slice %11 {offsets = [0, 0], sizes = [2, 32], strides = [1, 1]} : vector<2x128xf32> to vector<2x32xf32>
    %13 = arith.negf %12 : vector<2x32xf32>
    %14 = math.exp %13 : vector<2x32xf32>
    %cst_10 = arith.constant 1.000000e+00 : f32
    %15 = vector.broadcast %cst_10 : f32 to vector<2x32xf32>
    %16 = arith.addf %15, %14 : vector<2x32xf32>
    %17 = arith.divf %15, %16 : vector<2x32xf32>
    %18 = vector.extract_strided_slice %11 {offsets = [0, 32], sizes = [2, 32], strides = [1, 1]} : vector<2x128xf32> to vector<2x32xf32>
    %19 = arith.negf %18 : vector<2x32xf32>
    %20 = math.exp %19 : vector<2x32xf32>
    %cst_11 = arith.constant 1.000000e+00 : f32
    %21 = vector.broadcast %cst_11 : f32 to vector<2x32xf32>
    %22 = arith.addf %21, %20 : vector<2x32xf32>
    %23 = arith.divf %21, %22 : vector<2x32xf32>
    %24 = vector.extract_strided_slice %11 {offsets = [0, 64], sizes = [2, 32], strides = [1, 1]} : vector<2x128xf32> to vector<2x32xf32>
    %25 = arith.negf %24 : vector<2x32xf32>
    %26 = math.exp %25 : vector<2x32xf32>
    %cst_12 = arith.constant 1.000000e+00 : f32
    %27 = vector.broadcast %cst_12 : f32 to vector<2x32xf32>
    %28 = arith.addf %27, %26 : vector<2x32xf32>
    %29 = arith.divf %27, %28 : vector<2x32xf32>
    %30 = vector.extract_strided_slice %11 {offsets = [0, 96], sizes = [2, 32], strides = [1, 1]} : vector<2x128xf32> to vector<2x32xf32>
    %31 = math.tanh %30 : vector<2x32xf32>
    %32 = arith.mulf %17, %8 : vector<2x32xf32>
    %33 = arith.mulf %23, %31 : vector<2x32xf32>
    %34 = arith.addf %32, %33 : vector<2x32xf32>
    %35 = math.tanh %34 : vector<2x32xf32>
    %36 = arith.mulf %29, %35 : vector<2x32xf32>
    %c0_13 = arith.constant 0 : index
    %37 = memref.load %arg0[%c0_13] : memref<8xi32, #tpu.memory_space<smem>>
    %c0_i32 = arith.constant 0 : i32
    %38 = arith.cmpi ne, %37, %c0_i32 : i32
    %39 = arith.select %38, %36, %7 : vector<2x32xf32>
    %40 = arith.select %38, %34, %8 : vector<2x32xf32>
    %41 = vector.extract_strided_slice %6 {offsets = [2, 0], sizes = [2, 128], strides = [1, 1]} : vector<16x128xf32> to vector<2x128xf32>
    %cst_14 = arith.constant dense<0.000000e+00> : vector<2x128xf32>
    %42 = tpu.matmul %39, %0, %cst_14 {dimension_numbers = #tpu.dot_dimension_numbers<[1], [0], [0], [1], [0, 0, 1, 1], [], []>} : vector<2x32xf32>, vector<32x128xf32>, vector<2x128xf32> -> vector<2x128xf32>
    %43 = arith.addf %41, %42 : vector<2x128xf32>
    %44 = vector.extract_strided_slice %43 {offsets = [0, 0], sizes = [2, 32], strides = [1, 1]} : vector<2x128xf32> to vector<2x32xf32>
    %45 = arith.negf %44 : vector<2x32xf32>
    %46 = math.exp %45 : vector<2x32xf32>
    %cst_15 = arith.constant 1.000000e+00 : f32
    %47 = vector.broadcast %cst_15 : f32 to vector<2x32xf32>
    %48 = arith.addf %47, %46 : vector<2x32xf32>
    %49 = arith.divf %47, %48 : vector<2x32xf32>
    %50 = vector.extract_strided_slice %43 {offsets = [0, 32], sizes = [2, 32], strides = [1, 1]} : vector<2x128xf32> to vector<2x32xf32>
    %51 = arith.negf %50 : vector<2x32xf32>
    %52 = math.exp %51 : vector<2x32xf32>
    %cst_16 = arith.constant 1.000000e+00 : f32
    %53 = vector.broadcast %cst_16 : f32 to vector<2x32xf32>
    %54 = arith.addf %53, %52 : vector<2x32xf32>
    %55 = arith.divf %53, %54 : vector<2x32xf32>
    %56 = vector.extract_strided_slice %43 {offsets = [0, 64], sizes = [2, 32], strides = [1, 1]} : vector<2x128xf32> to vector<2x32xf32>
    %57 = arith.negf %56 : vector<2x32xf32>
    %58 = math.exp %57 : vector<2x32xf32>
    %cst_17 = arith.constant 1.000000e+00 : f32
    %59 = vector.broadcast %cst_17 : f32 to vector<2x32xf32>
    %60 = arith.addf %59, %58 : vector<2x32xf32>
    %61 = arith.divf %59, %60 : vector<2x32xf32>
    %62 = vector.extract_strided_slice %43 {offsets = [0, 96], sizes = [2, 32], strides = [1, 1]} : vector<2x128xf32> to vector<2x32xf32>
    %63 = math.tanh %62 : vector<2x32xf32>
    %64 = arith.mulf %49, %40 : vector<2x32xf32>
    %65 = arith.mulf %55, %63 : vector<2x32xf32>
    %66 = arith.addf %64, %65 : vector<2x32xf32>
    %67 = math.tanh %66 : vector<2x32xf32>
    %68 = arith.mulf %61, %67 : vector<2x32xf32>
    %c1 = arith.constant 1 : index
    %69 = memref.load %arg0[%c1] : memref<8xi32, #tpu.memory_space<smem>>
    %c0_i32_18 = arith.constant 0 : i32
    %70 = arith.cmpi ne, %69, %c0_i32_18 : i32
    %71 = arith.select %70, %68, %39 : vector<2x32xf32>
    %72 = arith.select %70, %66, %40 : vector<2x32xf32>
    %73 = vector.extract_strided_slice %6 {offsets = [4, 0], sizes = [2, 128], strides = [1, 1]} : vector<16x128xf32> to vector<2x128xf32>
    %cst_19 = arith.constant dense<0.000000e+00> : vector<2x128xf32>
    %74 = tpu.matmul %71, %0, %cst_19 {dimension_numbers = #tpu.dot_dimension_numbers<[1], [0], [0], [1], [0, 0, 1, 1], [], []>} : vector<2x32xf32>, vector<32x128xf32>, vector<2x128xf32> -> vector<2x128xf32>
    %75 = arith.addf %73, %74 : vector<2x128xf32>
    %76 = vector.extract_strided_slice %75 {offsets = [0, 0], sizes = [2, 32], strides = [1, 1]} : vector<2x128xf32> to vector<2x32xf32>
    %77 = arith.negf %76 : vector<2x32xf32>
    %78 = math.exp %77 : vector<2x32xf32>
    %cst_20 = arith.constant 1.000000e+00 : f32
    %79 = vector.broadcast %cst_20 : f32 to vector<2x32xf32>
    %80 = arith.addf %79, %78 : vector<2x32xf32>
    %81 = arith.divf %79, %80 : vector<2x32xf32>
    %82 = vector.extract_strided_slice %75 {offsets = [0, 32], sizes = [2, 32], strides = [1, 1]} : vector<2x128xf32> to vector<2x32xf32>
    %83 = arith.negf %82 : vector<2x32xf32>
    %84 = math.exp %83 : vector<2x32xf32>
    %cst_21 = arith.constant 1.000000e+00 : f32
    %85 = vector.broadcast %cst_21 : f32 to vector<2x32xf32>
    %86 = arith.addf %85, %84 : vector<2x32xf32>
    %87 = arith.divf %85, %86 : vector<2x32xf32>
    %88 = vector.extract_strided_slice %75 {offsets = [0, 64], sizes = [2, 32], strides = [1, 1]} : vector<2x128xf32> to vector<2x32xf32>
    %89 = arith.negf %88 : vector<2x32xf32>
    %90 = math.exp %89 : vector<2x32xf32>
    %cst_22 = arith.constant 1.000000e+00 : f32
    %91 = vector.broadcast %cst_22 : f32 to vector<2x32xf32>
    %92 = arith.addf %91, %90 : vector<2x32xf32>
    %93 = arith.divf %91, %92 : vector<2x32xf32>
    %94 = vector.extract_strided_slice %75 {offsets = [0, 96], sizes = [2, 32], strides = [1, 1]} : vector<2x128xf32> to vector<2x32xf32>
    %95 = math.tanh %94 : vector<2x32xf32>
    %96 = arith.mulf %81, %72 : vector<2x32xf32>
    %97 = arith.mulf %87, %95 : vector<2x32xf32>
    %98 = arith.addf %96, %97 : vector<2x32xf32>
    %99 = math.tanh %98 : vector<2x32xf32>
    %100 = arith.mulf %93, %99 : vector<2x32xf32>
    %c2 = arith.constant 2 : index
    %101 = memref.load %arg0[%c2] : memref<8xi32, #tpu.memory_space<smem>>
    %c0_i32_23 = arith.constant 0 : i32
    %102 = arith.cmpi ne, %101, %c0_i32_23 : i32
    %103 = arith.select %102, %100, %71 : vector<2x32xf32>
    %104 = arith.select %102, %98, %72 : vector<2x32xf32>
    %105 = vector.extract_strided_slice %6 {offsets = [6, 0], sizes = [2, 128], strides = [1, 1]} : vector<16x128xf32> to vector<2x128xf32>
    %cst_24 = arith.constant dense<0.000000e+00> : vector<2x128xf32>
    %106 = tpu.matmul %103, %0, %cst_24 {dimension_numbers = #tpu.dot_dimension_numbers<[1], [0], [0], [1], [0, 0, 1, 1], [], []>} : vector<2x32xf32>, vector<32x128xf32>, vector<2x128xf32> -> vector<2x128xf32>
    %107 = arith.addf %105, %106 : vector<2x128xf32>
    %108 = vector.extract_strided_slice %107 {offsets = [0, 0], sizes = [2, 32], strides = [1, 1]} : vector<2x128xf32> to vector<2x32xf32>
    %109 = arith.negf %108 : vector<2x32xf32>
    %110 = math.exp %109 : vector<2x32xf32>
    %cst_25 = arith.constant 1.000000e+00 : f32
    %111 = vector.broadcast %cst_25 : f32 to vector<2x32xf32>
    %112 = arith.addf %111, %110 : vector<2x32xf32>
    %113 = arith.divf %111, %112 : vector<2x32xf32>
    %114 = vector.extract_strided_slice %107 {offsets = [0, 32], sizes = [2, 32], strides = [1, 1]} : vector<2x128xf32> to vector<2x32xf32>
    %115 = arith.negf %114 : vector<2x32xf32>
    %116 = math.exp %115 : vector<2x32xf32>
    %cst_26 = arith.constant 1.000000e+00 : f32
    %117 = vector.broadcast %cst_26 : f32 to vector<2x32xf32>
    %118 = arith.addf %117, %116 : vector<2x32xf32>
    %119 = arith.divf %117, %118 : vector<2x32xf32>
    %120 = vector.extract_strided_slice %107 {offsets = [0, 64], sizes = [2, 32], strides = [1, 1]} : vector<2x128xf32> to vector<2x32xf32>
    %121 = arith.negf %120 : vector<2x32xf32>
    %122 = math.exp %121 : vector<2x32xf32>
    %cst_27 = arith.constant 1.000000e+00 : f32
    %123 = vector.broadcast %cst_27 : f32 to vector<2x32xf32>
    %124 = arith.addf %123, %122 : vector<2x32xf32>
    %125 = arith.divf %123, %124 : vector<2x32xf32>
    %126 = vector.extract_strided_slice %107 {offsets = [0, 96], sizes = [2, 32], strides = [1, 1]} : vector<2x128xf32> to vector<2x32xf32>
    %127 = math.tanh %126 : vector<2x32xf32>
    %128 = arith.mulf %113, %104 : vector<2x32xf32>
    %129 = arith.mulf %119, %127 : vector<2x32xf32>
    %130 = arith.addf %128, %129 : vector<2x32xf32>
    %131 = math.tanh %130 : vector<2x32xf32>
    %132 = arith.mulf %125, %131 : vector<2x32xf32>
    %c3 = arith.constant 3 : index
    %133 = memref.load %arg0[%c3] : memref<8xi32, #tpu.memory_space<smem>>
    %c0_i32_28 = arith.constant 0 : i32
    %134 = arith.cmpi ne, %133, %c0_i32_28 : i32
    %135 = arith.select %134, %132, %103 : vector<2x32xf32>
    %136 = arith.select %134, %130, %104 : vector<2x32xf32>
    %137 = vector.extract_strided_slice %6 {offsets = [8, 0], sizes = [2, 128], strides = [1, 1]} : vector<16x128xf32> to vector<2x128xf32>
    %cst_29 = arith.constant dense<0.000000e+00> : vector<2x128xf32>
    %138 = tpu.matmul %135, %0, %cst_29 {dimension_numbers = #tpu.dot_dimension_numbers<[1], [0], [0], [1], [0, 0, 1, 1], [], []>} : vector<2x32xf32>, vector<32x128xf32>, vector<2x128xf32> -> vector<2x128xf32>
    %139 = arith.addf %137, %138 : vector<2x128xf32>
    %140 = vector.extract_strided_slice %139 {offsets = [0, 0], sizes = [2, 32], strides = [1, 1]} : vector<2x128xf32> to vector<2x32xf32>
    %141 = arith.negf %140 : vector<2x32xf32>
    %142 = math.exp %141 : vector<2x32xf32>
    %cst_30 = arith.constant 1.000000e+00 : f32
    %143 = vector.broadcast %cst_30 : f32 to vector<2x32xf32>
    %144 = arith.addf %143, %142 : vector<2x32xf32>
    %145 = arith.divf %143, %144 : vector<2x32xf32>
    %146 = vector.extract_strided_slice %139 {offsets = [0, 32], sizes = [2, 32], strides = [1, 1]} : vector<2x128xf32> to vector<2x32xf32>
    %147 = arith.negf %146 : vector<2x32xf32>
    %148 = math.exp %147 : vector<2x32xf32>
    %cst_31 = arith.constant 1.000000e+00 : f32
    %149 = vector.broadcast %cst_31 : f32 to vector<2x32xf32>
    %150 = arith.addf %149, %148 : vector<2x32xf32>
    %151 = arith.divf %149, %150 : vector<2x32xf32>
    %152 = vector.extract_strided_slice %139 {offsets = [0, 64], sizes = [2, 32], strides = [1, 1]} : vector<2x128xf32> to vector<2x32xf32>
    %153 = arith.negf %152 : vector<2x32xf32>
    %154 = math.exp %153 : vector<2x32xf32>
    %cst_32 = arith.constant 1.000000e+00 : f32
    %155 = vector.broadcast %cst_32 : f32 to vector<2x32xf32>
    %156 = arith.addf %155, %154 : vector<2x32xf32>
    %157 = arith.divf %155, %156 : vector<2x32xf32>
    %158 = vector.extract_strided_slice %139 {offsets = [0, 96], sizes = [2, 32], strides = [1, 1]} : vector<2x128xf32> to vector<2x32xf32>
    %159 = math.tanh %158 : vector<2x32xf32>
    %160 = arith.mulf %145, %136 : vector<2x32xf32>
    %161 = arith.mulf %151, %159 : vector<2x32xf32>
    %162 = arith.addf %160, %161 : vector<2x32xf32>
    %163 = math.tanh %162 : vector<2x32xf32>
    %164 = arith.mulf %157, %163 : vector<2x32xf32>
    %c4 = arith.constant 4 : index
    %165 = memref.load %arg0[%c4] : memref<8xi32, #tpu.memory_space<smem>>
    %c0_i32_33 = arith.constant 0 : i32
    %166 = arith.cmpi ne, %165, %c0_i32_33 : i32
    %167 = arith.select %166, %164, %135 : vector<2x32xf32>
    %168 = arith.select %166, %162, %136 : vector<2x32xf32>
    %169 = vector.extract_strided_slice %6 {offsets = [10, 0], sizes = [2, 128], strides = [1, 1]} : vector<16x128xf32> to vector<2x128xf32>
    %cst_34 = arith.constant dense<0.000000e+00> : vector<2x128xf32>
    %170 = tpu.matmul %167, %0, %cst_34 {dimension_numbers = #tpu.dot_dimension_numbers<[1], [0], [0], [1], [0, 0, 1, 1], [], []>} : vector<2x32xf32>, vector<32x128xf32>, vector<2x128xf32> -> vector<2x128xf32>
    %171 = arith.addf %169, %170 : vector<2x128xf32>
    %172 = vector.extract_strided_slice %171 {offsets = [0, 0], sizes = [2, 32], strides = [1, 1]} : vector<2x128xf32> to vector<2x32xf32>
    %173 = arith.negf %172 : vector<2x32xf32>
    %174 = math.exp %173 : vector<2x32xf32>
    %cst_35 = arith.constant 1.000000e+00 : f32
    %175 = vector.broadcast %cst_35 : f32 to vector<2x32xf32>
    %176 = arith.addf %175, %174 : vector<2x32xf32>
    %177 = arith.divf %175, %176 : vector<2x32xf32>
    %178 = vector.extract_strided_slice %171 {offsets = [0, 32], sizes = [2, 32], strides = [1, 1]} : vector<2x128xf32> to vector<2x32xf32>
    %179 = arith.negf %178 : vector<2x32xf32>
    %180 = math.exp %179 : vector<2x32xf32>
    %cst_36 = arith.constant 1.000000e+00 : f32
    %181 = vector.broadcast %cst_36 : f32 to vector<2x32xf32>
    %182 = arith.addf %181, %180 : vector<2x32xf32>
    %183 = arith.divf %181, %182 : vector<2x32xf32>
    %184 = vector.extract_strided_slice %171 {offsets = [0, 64], sizes = [2, 32], strides = [1, 1]} : vector<2x128xf32> to vector<2x32xf32>
    %185 = arith.negf %184 : vector<2x32xf32>
    %186 = math.exp %185 : vector<2x32xf32>
    %cst_37 = arith.constant 1.000000e+00 : f32
    %187 = vector.broadcast %cst_37 : f32 to vector<2x32xf32>
    %188 = arith.addf %187, %186 : vector<2x32xf32>
    %189 = arith.divf %187, %188 : vector<2x32xf32>
    %190 = vector.extract_strided_slice %171 {offsets = [0, 96], sizes = [2, 32], strides = [1, 1]} : vector<2x128xf32> to vector<2x32xf32>
    %191 = math.tanh %190 : vector<2x32xf32>
    %192 = arith.mulf %177, %168 : vector<2x32xf32>
    %193 = arith.mulf %183, %191 : vector<2x32xf32>
    %194 = arith.addf %192, %193 : vector<2x32xf32>
    %195 = math.tanh %194 : vector<2x32xf32>
    %196 = arith.mulf %189, %195 : vector<2x32xf32>
    %c5 = arith.constant 5 : index
    %197 = memref.load %arg0[%c5] : memref<8xi32, #tpu.memory_space<smem>>
    %c0_i32_38 = arith.constant 0 : i32
    %198 = arith.cmpi ne, %197, %c0_i32_38 : i32
    %199 = arith.select %198, %196, %167 : vector<2x32xf32>
    %200 = arith.select %198, %194, %168 : vector<2x32xf32>
    %201 = vector.extract_strided_slice %6 {offsets = [12, 0], sizes = [2, 128], strides = [1, 1]} : vector<16x128xf32> to vector<2x128xf32>
    %cst_39 = arith.constant dense<0.000000e+00> : vector<2x128xf32>
    %202 = tpu.matmul %199, %0, %cst_39 {dimension_numbers = #tpu.dot_dimension_numbers<[1], [0], [0], [1], [0, 0, 1, 1], [], []>} : vector<2x32xf32>, vector<32x128xf32>, vector<2x128xf32> -> vector<2x128xf32>
    %203 = arith.addf %201, %202 : vector<2x128xf32>
    %204 = vector.extract_strided_slice %203 {offsets = [0, 0], sizes = [2, 32], strides = [1, 1]} : vector<2x128xf32> to vector<2x32xf32>
    %205 = arith.negf %204 : vector<2x32xf32>
    %206 = math.exp %205 : vector<2x32xf32>
    %cst_40 = arith.constant 1.000000e+00 : f32
    %207 = vector.broadcast %cst_40 : f32 to vector<2x32xf32>
    %208 = arith.addf %207, %206 : vector<2x32xf32>
    %209 = arith.divf %207, %208 : vector<2x32xf32>
    %210 = vector.extract_strided_slice %203 {offsets = [0, 32], sizes = [2, 32], strides = [1, 1]} : vector<2x128xf32> to vector<2x32xf32>
    %211 = arith.negf %210 : vector<2x32xf32>
    %212 = math.exp %211 : vector<2x32xf32>
    %cst_41 = arith.constant 1.000000e+00 : f32
    %213 = vector.broadcast %cst_41 : f32 to vector<2x32xf32>
    %214 = arith.addf %213, %212 : vector<2x32xf32>
    %215 = arith.divf %213, %214 : vector<2x32xf32>
    %216 = vector.extract_strided_slice %203 {offsets = [0, 64], sizes = [2, 32], strides = [1, 1]} : vector<2x128xf32> to vector<2x32xf32>
    %217 = arith.negf %216 : vector<2x32xf32>
    %218 = math.exp %217 : vector<2x32xf32>
    %cst_42 = arith.constant 1.000000e+00 : f32
    %219 = vector.broadcast %cst_42 : f32 to vector<2x32xf32>
    %220 = arith.addf %219, %218 : vector<2x32xf32>
    %221 = arith.divf %219, %220 : vector<2x32xf32>
    %222 = vector.extract_strided_slice %203 {offsets = [0, 96], sizes = [2, 32], strides = [1, 1]} : vector<2x128xf32> to vector<2x32xf32>
    %223 = math.tanh %222 : vector<2x32xf32>
    %224 = arith.mulf %209, %200 : vector<2x32xf32>
    %225 = arith.mulf %215, %223 : vector<2x32xf32>
    %226 = arith.addf %224, %225 : vector<2x32xf32>
    %227 = math.tanh %226 : vector<2x32xf32>
    %228 = arith.mulf %221, %227 : vector<2x32xf32>
    %c6 = arith.constant 6 : index
    %229 = memref.load %arg0[%c6] : memref<8xi32, #tpu.memory_space<smem>>
    %c0_i32_43 = arith.constant 0 : i32
    %230 = arith.cmpi ne, %229, %c0_i32_43 : i32
    %231 = arith.select %230, %228, %199 : vector<2x32xf32>
    %232 = arith.select %230, %226, %200 : vector<2x32xf32>
    %233 = vector.extract_strided_slice %6 {offsets = [14, 0], sizes = [2, 128], strides = [1, 1]} : vector<16x128xf32> to vector<2x128xf32>
    %cst_44 = arith.constant dense<0.000000e+00> : vector<2x128xf32>
    %234 = tpu.matmul %231, %0, %cst_44 {dimension_numbers = #tpu.dot_dimension_numbers<[1], [0], [0], [1], [0, 0, 1, 1], [], []>} : vector<2x32xf32>, vector<32x128xf32>, vector<2x128xf32> -> vector<2x128xf32>
    %235 = arith.addf %233, %234 : vector<2x128xf32>
    %236 = vector.extract_strided_slice %235 {offsets = [0, 0], sizes = [2, 32], strides = [1, 1]} : vector<2x128xf32> to vector<2x32xf32>
    %237 = arith.negf %236 : vector<2x32xf32>
    %238 = math.exp %237 : vector<2x32xf32>
    %cst_45 = arith.constant 1.000000e+00 : f32
    %239 = vector.broadcast %cst_45 : f32 to vector<2x32xf32>
    %240 = arith.addf %239, %238 : vector<2x32xf32>
    %241 = arith.divf %239, %240 : vector<2x32xf32>
    %242 = vector.extract_strided_slice %235 {offsets = [0, 32], sizes = [2, 32], strides = [1, 1]} : vector<2x128xf32> to vector<2x32xf32>
    %243 = arith.negf %242 : vector<2x32xf32>
    %244 = math.exp %243 : vector<2x32xf32>
    %cst_46 = arith.constant 1.000000e+00 : f32
    %245 = vector.broadcast %cst_46 : f32 to vector<2x32xf32>
    %246 = arith.addf %245, %244 : vector<2x32xf32>
    %247 = arith.divf %245, %246 : vector<2x32xf32>
    %248 = vector.extract_strided_slice %235 {offsets = [0, 64], sizes = [2, 32], strides = [1, 1]} : vector<2x128xf32> to vector<2x32xf32>
    %249 = arith.negf %248 : vector<2x32xf32>
    %250 = math.exp %249 : vector<2x32xf32>
    %cst_47 = arith.constant 1.000000e+00 : f32
    %251 = vector.broadcast %cst_47 : f32 to vector<2x32xf32>
    %252 = arith.addf %251, %250 : vector<2x32xf32>
    %253 = arith.divf %251, %252 : vector<2x32xf32>
    %254 = vector.extract_strided_slice %235 {offsets = [0, 96], sizes = [2, 32], strides = [1, 1]} : vector<2x128xf32> to vector<2x32xf32>
    %255 = math.tanh %254 : vector<2x32xf32>
    %256 = arith.mulf %241, %232 : vector<2x32xf32>
    %257 = arith.mulf %247, %255 : vector<2x32xf32>
    %258 = arith.addf %256, %257 : vector<2x32xf32>
    %259 = math.tanh %258 : vector<2x32xf32>
    %260 = arith.mulf %253, %259 : vector<2x32xf32>
    %c7 = arith.constant 7 : index
    %261 = memref.load %arg0[%c7] : memref<8xi32, #tpu.memory_space<smem>>
    %c0_i32_48 = arith.constant 0 : i32
    %262 = arith.cmpi ne, %261, %c0_i32_48 : i32
    %263 = arith.select %262, %260, %231 : vector<2x32xf32>
    %c0_49 = arith.constant 0 : index
    %c0_50 = arith.constant 0 : index
    %264 = vector.load %arg5[%c0_49, %c0_50] : memref<32x3xf32, #tpu.memory_space<vmem>>, vector<32x3xf32>
    %cst_51 = arith.constant dense<0.000000e+00> : vector<2x3xf32>
    %265 = tpu.matmul %263, %264, %cst_51 {dimension_numbers = #tpu.dot_dimension_numbers<[1], [0], [0], [1], [0, 0, 1, 1], [], []>} : vector<2x32xf32>, vector<32x3xf32>, vector<2x3xf32> -> vector<2x3xf32>
    %c0_52 = arith.constant 0 : index
    %c0_53 = arith.constant 0 : index
    %266 = vector.load %arg6[%c0_52, %c0_53] : memref<1x3xf32, #tpu.memory_space<vmem>>, vector<1x3xf32>
    %267 = vector.broadcast %266 : vector<1x3xf32> to vector<2x3xf32>
    %268 = arith.addf %265, %267 : vector<2x3xf32>
    %cst_54 = arith.constant dense<0xFF800000> : vector<2xf32>
    %269 = vector.multi_reduction <maximumf>, %268, %cst_54 [1] : vector<2x3xf32> to vector<2xf32>
    %270 = vector.shape_cast %269 : vector<2xf32> to vector<2x1xf32>
    %271 = vector.broadcast %270 : vector<2x1xf32> to vector<2x3xf32>
    %272 = arith.subf %268, %271 : vector<2x3xf32>
    %273 = math.exp %272 : vector<2x3xf32>
    %cst_55 = arith.constant dense<0.000000e+00> : vector<2xf32>
    %274 = vector.multi_reduction <add>, %273, %cst_55 [1] : vector<2x3xf32> to vector<2xf32>
    %275 = vector.shape_cast %274 : vector<2xf32> to vector<2x1xf32>
    %276 = vector.broadcast %275 : vector<2x1xf32> to vector<2x3xf32>
    %277 = arith.divf %273, %276 : vector<2x3xf32>
    %c0_56 = arith.constant 0 : index
    %c0_57 = arith.constant 0 : index
    %278 = vector.load %arg7[%c0_56, %c0_57] : memref<2x3xf32, #tpu.memory_space<vmem>>, vector<2x3xf32>
    tpu.vector_store %arg7[%c0_56, %c0_57], %277 {strides = array<i32>} : memref<2x3xf32, #tpu.memory_space<vmem>>, vector<2x3xf32>,
    return
  }
}

</mosaic_0001>

<bundles_post_ra>
// kernel: gcn_lstm_classifier.1
= control target key start
LH: loop header
LB: loop body
LE: loop exit
PB: predicated region body
PF: predicated region fallthrough
CT: control target
= control target key end

     0   :  { %12 = vsyncpa [#allocation5], 0  ;;  %s1224_s0 = inlined_call_operand.vmem [shape: s32[8], index: 0, kind: input, shape index: {}]   ;;  %s1225_s1 = inlined_call_operand.vmem [shape: f32[16,84], index: 1, kind: input, shape index: {}]   ;;  %s1226_s2 = inlined_call_operand.hbm [shape: f32[84,128], index: 2, kind: input, shape index: {}]   ;;  %s1227_s3 = inlined_call_operand.vmem [shape: f32[32,128], index: 3, kind: input, shape index: {}]   ;;  %s1228_s4 = inlined_call_operand.vmem [shape: f32[1,128], index: 4, kind: input, shape index: {}]   ;;  %s1229_s5 = inlined_call_operand.vmem [shape: f32[32,3], index: 5, kind: input, shape index: {}]   ;;  %s1230_s6 = inlined_call_operand.vmem [shape: f32[1,3], index: 6, kind: input, shape index: {}]   ;;  %s1231_s7 = inlined_call_operand.hbm [shape: f32[2,3], index: 7, kind: output, shape index: {}]  }
   0x1   :  { %13 = vsyncpa [#allocation3], 0 }
   0x2   :  { %14 = vsyncpa [#allocation4], 0  ;;  %s20_s26 = sshll.u32 %s1224_s0, 4  ;;  %s30_s29 = sshll.u32 %s1226_s2, 4  ;;  %s21_s26 = int_to_ptr.vmem [resolvable:$true] %s20_s26  ;;  %s31_s29 = int_to_ptr.hbm [resolvable:$true] %s30_s29 }
   0x3   :  { %s974_s30 = smov [#allocation2]   ;;  %s975_s8 = smov [#allocation6]  }
   0x4   :  { %23 = dma.vmem_to_smem %s21_s26, 16, %s974_s30, [#allocation5]  }
   0x5   :  { %s32_s9 = sshll.u32 %s975_s8, 4  ;;  %s976_s10 = smov 128   ;;  %s33_s9 = int_to_ptr.vmem [resolvable:$true] %s32_s9 }
   0x6   :  { %s977_s11 = smov 8  }
   0x7   :  { %38 = dma.hbm_to_vmem [thread:$0]  %s31_s29, 1408, %s33_s9, [#allocation3], %s976_s10, %s976_s10, %s977_s11  }
   0x8   :  { %968 = dma.done.wait [#allocation5], 16  }
   0x9   :  { %969 = vsyncadd [#allocation5], 4294967280 }
   0xa   :  { %970 = dma.done.wait [#allocation3], 1408  }
   0xb   :  { %971 = vsyncadd [#allocation3], 4294965888 }
   0xc   :  { %55 = sfence }
   0xd   :  { %v72_v0 = vld [vmem:[#allocation6 + $0x50] sm:$0xf]  ;;  %vm84_vm0 = vcmask 1043456   ;;  %v71_v1 = vld [vmem:[#allocation6 + $0x48] sm:$0xff]  ;;  %v70_v2 = vld [vmem:[#allocation6 + $0x40] sm:$0xff]  ;;  %v978_v11 = vmov 0.0  }
   0xe   :  { %804 = vmatpush.msk.msra.mxu0 %vm84_vm0, %v72_v0  ;;  %v1031_v3 = vld [vmem:[%s1227_s3 + $0x18] sm:$0xff]  ;;  %v1036_v4 = vld [vmem:[%s1227_s3 + $0x10] sm:$0xff]  ;;  %v1043_v6 = vld [vmem:[%s1227_s3 + $0x8] sm:$0xff]  ;;  %vm77_vm1 = vcmask 687104   ;;  %s979_s21 = smov 64   ;;  %s173_s22 = sld [smem:[#allocation2]] }
   0xf   :  { %v69_v5 = vld [vmem:[#allocation6 + $0x38] sm:$0xff]  ;;  %127 = vmatpush.msra.mxu1 %v1031_v3  ;;  %197 = vmatpush.msra.mxu2 %v1031_v3  ;;  %v68_v7 = vld [vmem:[#allocation6 + $0x30] sm:$0xff]  ;;  %v1051_v8 = vld [vmem:[%s1227_s3] sm:$0xff]  ;;  %vm111_vm7 = vcmask 261120   ;;  %s810_s24 = sld [smem:[#allocation2 + $0x1]] }
  0x10   :  { %94 = vmatpush.msra.mxu0 %v71_v1  ;;  %276 = vmatpush.msra.mxu3 %v1031_v3  ;;  %v67_v9 = vld [vmem:[#allocation6 + $0x28] sm:$0xff]  ;;  %v66_v10 = vld [vmem:[#allocation6 + $0x20] sm:$0xff]  ;;  %v65_v12 = vld [vmem:[#allocation6 + $0x18] sm:$0xff]  ;;  %s813_s26 = sld [smem:[#allocation2 + $0x2]] }
  0x11   :  { %128 = vmatpush.msra.mxu1 %v1036_v4  ;;  %198 = vmatpush.msra.mxu2 %v1036_v4  ;;  %v64_v13 = vld [vmem:[#allocation6 + $0x10] sm:$0xff]  ;;  %v63_v14 = vld [vmem:[#allocation6 + $0x8] sm:$0xff]  ;;  %v62_v15 = vld [vmem:[#allocation6] sm:$0xff]  ;;  %s816_s28 = sld [smem:[#allocation2 + $0x3]] }
  0x12   :  { %95 = vmatpush.msra.mxu0 %v70_v2  ;;  %277 = vmatpush.msra.mxu3 %v1036_v4  ;;  %v60_v16 = vld [vmem:[%s1225_s1] sm:$0xff]  ;;  %s822_s10 = sld [smem:[#allocation2 + $0x5]] }
  0x13   :  { %129 = vmatpush.msra.mxu1 %v1043_v6  ;;  %199 = vmatpush.msra.mxu2 %v1043_v6  ;;  %v1083_v17 = vld [vmem:[%s1228_s4] ss:$0 sm:$0xff]  ;;  %s980_s4 = smov 96   ;;  %s825_s0 = sld [smem:[#allocation2 + $0x6]] }
  0x14   :  { %96 = vmatpush.msra.mxu0 %v69_v5  ;;  %278 = vmatpush.msra.mxu3 %v1043_v6  ;;  %p174_p0 = scmp.ne.s32.totalorder %s173_s22, 0  ;;  %s828_s19 = sld [smem:[#allocation2 + $0x7]] }
  0x15   :  { %130 = vmatpush.msra.mxu1 %v1051_v8  ;;  %200 = vmatpush.msra.mxu2 %v1051_v8  ;;  %p250_p1 = scmp.ne.s32.totalorder %s810_s24, 0  ;;  %s793_s24 = sshll.u32 %s1231_s7, 4  ;;  %s794_s24 = int_to_ptr.hbm [resolvable:$true] %s793_s24 }
  0x16   :  { %97 = vmatpush.msra.mxu0 %v68_v7  ;;  %131 = vmatmul.f32.vlgmr.msra.gmra.mxu1 %v978_v11  ;;  %s175_s23 = scalar_select %p174_p0, 1, 0 }
  0x17   :  { %279 = vmatpush.msra.mxu3 %v1051_v8  ;;  %355 = vmatpush.msrb.mxu1 %v1031_v3  ;;  %s251_s25 = scalar_select %p250_p1, 1, 0 }
  0x18   :  { %98 = vmatpush.msra.mxu0 %v67_v9  ;;  %434 = vmatpush.msrb.mxu2 %v1031_v3  ;;  %v176_v42 = vstv %s175_s23  ;;  %p329_p2 = scmp.ne.s32.totalorder %s813_s26, 0  ;;  %p408_p3 = scmp.ne.s32.totalorder %s816_s28, 0 }
  0x19   :  { %356 = vmatpush.msrb.mxu1 %v1036_v4  ;;  %508 = vmatpush.msrb.mxu3 %v1031_v3  ;;  %vm1092_vm6 = vcmp.eq.s32.totalorder %v176_v42, 1  ;;  %v252_v9 = vstv %s251_s25  ;;  %p561_p5 = scmp.ne.s32.totalorder %s822_s10, 0  ;;  %p640_p6 = scmp.ne.s32.totalorder %s825_s0, 0 }
  0x1a   :  { %99 = vmatpush.msra.mxu0 %v66_v10  ;;  %435 = vmatpush.msrb.mxu2 %v1036_v4  ;;  %vm1110_vm12 = vcmp.eq.s32.totalorder %v252_v9, 1  ;;  %s330_s27 = scalar_select %p329_p2, 1, 0 }
  0x1b   :  { %357 = vmatpush.msrb.mxu1 %v1043_v6  ;;  %509 = vmatpush.msrb.mxu3 %v1036_v4  ;;  %s409_s29 = scalar_select %p408_p3, 1, 0 }
  0x1c   :  { %100 = vmatpush.msra.mxu0 %v65_v12  ;;  %436 = vmatpush.msrb.mxu2 %v1043_v6  ;;  %s562_s11 = scalar_select %p561_p5, 1, 0 }
  0x1d   :  { %358 = vmatpush.msrb.mxu1 %v1051_v8  ;;  %510 = vmatpush.msrb.mxu3 %v1043_v6  ;;  %s641_s2 = scalar_select %p640_p6, 1, 0 }
  0x1e   :  { %101 = vmatpush.msra.mxu0 %v64_v13  ;;  %437 = vmatpush.msrb.mxu2 %v1051_v8  ;;  %p719_p7 = scmp.ne.s32.totalorder %s828_s19, 0 }
  0x1f   :  { %511 = vmatpush.msrb.mxu3 %v1051_v8  ;;  %587 = vmatpush.msra.mxu1 %v1031_v3 }
  0x20   :  { %102 = vmatpush.msra.mxu0 %v63_v14  ;;  %s720_s20 = scalar_select %p719_p7, 1, 0 }
  0x21   :  { %588 = vmatpush.msra.mxu1 %v1036_v4 }
  0x22   :  { %103 = vmatpush.msra.mxu0 %v62_v15 }
  0x23   :  { %805 = vmatmul.msk.f32.vlgmr.msra.gmra.mxu0 %vm77_vm1, %v60_v16  ;;  %589 = vmatpush.msra.mxu1 %v1043_v6 }
  0x25   :  { %590 = vmatpush.msra.mxu1 %v1051_v8 }
  0x93   :  { %v132_v19 = vpop.f32.mrf.mxu1 }
  0xa0   :  { %v105_v18 = vpop.f32.mrf.mxu0 }
  0xa1   :  { %v1086_v20 = vadd.f32 %v1083_v17, %v105_v18 }
  0xa3   :  { %v135_v21 = vadd.f32 %v132_v19, %v1086_v20 }
  0xa5   :  { %840 = vtanh.f32 %v135_v21  ;;  %v807_v23 = vmul.f32 -1.442695, %v135_v21 }
  0xa7   :  { %842 = vpow2.f32 %v807_v23 }
  0xab   :  { %v841_v22 = vpop.eup %840 }
  0xac   :  { %158 = vrot.lane.b32.xlu0 %v841_v22, %s979_s21 }
  0xad   :  { %v843_v24 = vpop.eup %842 }
  0xae   :  { %v139_v25 = vadd.f32 1.0, %v843_v24 }
  0xb0   :  { %844 = vrcp.f32 %v139_v25  ;;  %v151_v31 = vand.u32 2147483648, %v139_v25  ;;  %vm145_vm3 = vweird.f32 %v139_v25  ;;  %v149_v32 = vand.u32 2147483647, %v139_v25 }
  0xb2   :  { %v152_v34 = vor.u32 1.1754944e-38, %v151_v31  ;;  %vm150_vm5 = vcmp.eq.f32.partialorder %v149_v32, 8.507059e+37 }
  0xb6   :  { %v845_v26 = vpop.eup %844 }
  0xb7   :  { %v141_v27 = vmul.f32 %v845_v26, %v139_v25  ;;  %vm146_vm2 = vweird.f32 %v845_v26 }
  0xb8   :  { %vm147_vm4 = vmor %vm145_vm3, %vm146_vm2 }
  0xb9   :  { %v142_v28 = vsub.f32 1.0, %v141_v27 }
  0xbb   :  { %v143_v29 = vmul.f32 %v845_v26, %v142_v28 }
  0xbd   :  { %v144_v30 = vadd.f32 %v845_v26, %v143_v29 }
  0xbf   :  { %v148_v33 = vsel %vm147_vm4, %v845_v26, %v144_v30 }
  0xc0   :  { %v153_v36 = vsel %vm150_vm5, %v152_v34, %v148_v33 }
  0xc1   :  { %v156_v38 = vmul.f32 0.0, %v153_v36 }
 0x11e   :  { %v159_v35 = vpop.permute.xlu0 %158 }
 0x11f   :  { %v161_v37 = vmul.f32 %v159_v35, %v153_v36 }
 0x121   :  { %163 = vrot.lane.b32.xlu0 %v161_v37, %s980_s4 }
 0x193   :  { %v164_v39 = vpop.permute.xlu0 %163 }
 0x194   :  { %v166_v40 = vadd.f32 %v164_v39, %v156_v38 }
 0x196   :  { %846 = vtanh.f32 %v166_v40 }
 0x19c   :  { %v847_v41 = vpop.eup %846 }
 0x19d   :  { %169 = vrot.lane.b32.xlu1 %v847_v41, %s979_s21 }
 0x20f   :  { %v170_v43 = vpop.permute.xlu1 %169 }
 0x210   :  { %v172_v44 = vmul.f32 %v170_v43, %v153_v36 }
 0x212   :  { %v178_v46 = vsel %vm1092_vm6, %v172_v44, 0.0  ;;  %v331_v44 = vstv %s330_s27 }
 0x213   :  { %181 = vrot.lane.b32.xlu1 %v178_v46, %s979_s21  ;;  %v254_v11 = vrot.slane %v178_v46, 6  ;;  %vm1124_vm2 = vcmp.eq.s32.totalorder %v331_v44, 1 }
 0x285   :  { %v182_v47 = vpop.permute.xlu1 %181 }
 0x286   :  { %808 = vmatmul.msk.f32.vlgmr.msra.gmra.mxu2 %vm111_vm7, %v182_v47 }
 0x287   :  { %666 = vmatpush.msra.mxu2 %v1031_v3  ;;  %v179_v3 = vsel %vm1092_vm6, %v166_v40, 0.0 }
 0x289   :  { %667 = vmatpush.msra.mxu2 %v1036_v4  ;;  %v230_v4 = vrot.slane %v179_v3, 6 }
 0x28b   :  { %668 = vmatpush.msra.mxu2 %v1043_v6 }
 0x28d   :  { %669 = vmatpush.msra.mxu2 %v1051_v8 }
 0x309   :  { %v202_v48 = vpop.f32.mrf.mxu2 }
 0x30a   :  { %v206_v49 = vrot.slane %v202_v48, 6 }
 0x30c   :  { %v208_v50 = vadd.f32 %v206_v49, %v1086_v20 }
 0x30e   :  { %848 = vtanh.f32 %v208_v50  ;;  %v809_v52 = vmul.f32 -1.442695, %v208_v50 }
 0x310   :  { %850 = vpow2.f32 %v809_v52 }
 0x314   :  { %v849_v51 = vpop.eup %848 }
 0x315   :  { %234 = vrot.lane.b32.xlu2 %v849_v51, %s979_s21 }
 0x316   :  { %v851_v53 = vpop.eup %850 }
 0x317   :  { %v212_v54 = vadd.f32 1.0, %v851_v53 }
 0x319   :  { %852 = vrcp.f32 %v212_v54  ;;  %v224_v60 = vand.u32 2147483648, %v212_v54  ;;  %vm218_vm9 = vweird.f32 %v212_v54  ;;  %v222_v61 = vand.u32 2147483647, %v212_v54 }
 0x31b   :  { %v225_v63 = vor.u32 1.1754944e-38, %v224_v60  ;;  %vm223_vm11 = vcmp.eq.f32.partialorder %v222_v61, 8.507059e+37 }
 0x31f   :  { %v853_v55 = vpop.eup %852 }
 0x320   :  { %v214_v56 = vmul.f32 %v853_v55, %v212_v54  ;;  %vm219_vm8 = vweird.f32 %v853_v55 }
 0x321   :  { %vm220_vm10 = vmor %vm218_vm9, %vm219_vm8 }
 0x322   :  { %v215_v57 = vsub.f32 1.0, %v214_v56 }
 0x324   :  { %v216_v58 = vmul.f32 %v853_v55, %v215_v57 }
 0x326   :  { %v217_v59 = vadd.f32 %v853_v55, %v216_v58 }
 0x328   :  { %v221_v62 = vsel %vm220_vm10, %v853_v55, %v217_v59 }
 0x329   :  { %v226_v1 = vsel %vm223_vm11, %v225_v63, %v221_v62 }
 0x32a   :  { %v232_v5 = vmul.f32 %v230_v4, %v226_v1 }
 0x36f   :  { %v235_v0 = vpop.permute.xlu2 %234 }
 0x370   :  { %v237_v2 = vmul.f32 %v235_v0, %v226_v1 }
 0x372   :  { %239 = vrot.lane.b32.xlu2 %v237_v2, %s980_s4 }
 0x3cc   :  { %v240_v6 = vpop.permute.xlu2 %239 }
 0x3cd   :  { %v242_v7 = vadd.f32 %v240_v6, %v232_v5 }
 0x3cf   :  { %854 = vtanh.f32 %v242_v7  ;;  %v257_v38 = vsel %vm1110_vm12, %v242_v7, %v230_v4 }
 0x3d0   :  { %v309_v39 = vrot.slane %v257_v38, 6 }
 0x3d5   :  { %v855_v8 = vpop.eup %854 }
 0x3d6   :  { %245 = vrot.lane.b32.xlu0 %v855_v8, %s979_s21 }
 0x448   :  { %v246_v10 = vpop.permute.xlu0 %245 }
 0x449   :  { %v248_v12 = vmul.f32 %v246_v10, %v226_v1 }
 0x44b   :  { %v256_v14 = vsel %vm1110_vm12, %v248_v12, %v254_v11  ;;  %v410_v12 = vstv %s409_s29 }
 0x44c   :  { %v259_v15 = vrot.slane %v256_v14, 2  ;;  %v333_v46 = vrot.slane %v256_v14, 6  ;;  %vm1138_vm8 = vcmp.eq.s32.totalorder %v410_v12, 1 }
 0x44e   :  { %260 = vrot.lane.b32.xlu1 %v259_v15, %s979_s21 }
 0x4c0   :  { %v261_v16 = vpop.permute.xlu1 %260 }
 0x4c1   :  { %811 = vmatmul.msk.f32.vlgmr.msra.gmra.mxu3 %vm111_vm7, %v261_v16 }
 0x544   :  { %v281_v18 = vpop.f32.mrf.mxu3 }
 0x545   :  { %v285_v19 = vrot.slane %v281_v18, 4 }
 0x547   :  { %v287_v21 = vadd.f32 %v285_v19, %v1086_v20 }
 0x549   :  { %856 = vtanh.f32 %v287_v21  ;;  %v812_v23 = vmul.f32 -1.442695, %v287_v21  ;;  %v61_v21 = vld [vmem:[%s1225_s1 + $0x8] sm:$0xff]  ;;  %s819_s1 = sld [smem:[#allocation2 + $0x4]] }
 0x54a   :  { %806 = vmatmul.msk.f32.gmra.mxu0 %vm77_vm1, %v61_v21 }
 0x54b   :  { %858 = vpow2.f32 %v812_v23 }
 0x54f   :  { %v857_v22 = vpop.eup %856  ;;  %p484_p4 = scmp.ne.s32.totalorder %s819_s1, 0 }
 0x550   :  { %313 = vrot.lane.b32.xlu2 %v857_v22, %s979_s21 }
 0x551   :  { %v859_v24 = vpop.eup %858  ;;  %s485_s9 = scalar_select %p484_p4, 1, 0 }
 0x552   :  { %v291_v25 = vadd.f32 1.0, %v859_v24 }
 0x553   :  { %v486_v48 = vstv %s485_s9 }
 0x554   :  { %860 = vrcp.f32 %v291_v25  ;;  %v303_v31 = vand.u32 2147483648, %v291_v25  ;;  %vm297_vm14 = vweird.f32 %v291_v25  ;;  %v301_v32 = vand.u32 2147483647, %v291_v25 }
 0x555   :  { %vm1159_vm12 = vcmp.eq.s32.totalorder %v486_v48, 1 }
 0x556   :  { %v304_v34 = vor.u32 1.1754944e-38, %v303_v31  ;;  %vm302_vm0 = vcmp.eq.f32.partialorder %v301_v32, 8.507059e+37 }
 0x55a   :  { %v861_v26 = vpop.eup %860 }
 0x55b   :  { %v293_v27 = vmul.f32 %v861_v26, %v291_v25  ;;  %vm298_vm13 = vweird.f32 %v861_v26 }
 0x55c   :  { %vm299_vm15 = vmor %vm297_vm14, %vm298_vm13 }
 0x55d   :  { %v294_v28 = vsub.f32 1.0, %v293_v27 }
 0x55f   :  { %v295_v29 = vmul.f32 %v861_v26, %v294_v28 }
 0x561   :  { %v296_v30 = vadd.f32 %v861_v26, %v295_v29 }
 0x563   :  { %v300_v33 = vsel %vm299_vm15, %v861_v26, %v296_v30 }
 0x564   :  { %v305_v36 = vsel %vm302_vm0, %v304_v34, %v300_v33 }
 0x565   :  { %v311_v40 = vmul.f32 %v309_v39, %v305_v36 }
 0x5aa   :  { %v314_v35 = vpop.permute.xlu2 %313 }
 0x5ab   :  { %v316_v37 = vmul.f32 %v314_v35, %v305_v36 }
 0x5ad   :  { %318 = vrot.lane.b32.xlu0 %v316_v37, %s980_s4 }
 0x5c7   :  { %v108_v23 = vpop.f32.mrf.mxu0 }
 0x5c8   :  { %v1151_v24 = vadd.f32 %v1083_v17, %v108_v23 }
 0x61f   :  { %v319_v41 = vpop.permute.xlu0 %318 }
 0x620   :  { %v321_v42 = vadd.f32 %v319_v41, %v311_v40 }
 0x622   :  { %862 = vtanh.f32 %v321_v42  ;;  %v336_v6 = vsel %vm1124_vm2, %v321_v42, %v309_v39 }
 0x623   :  { %v388_v7 = vrot.slane %v336_v6, 6 }
 0x628   :  { %v863_v43 = vpop.eup %862 }
 0x629   :  { %324 = vrot.lane.b32.xlu1 %v863_v43, %s979_s21 }
 0x69b   :  { %v325_v45 = vpop.permute.xlu1 %324 }
 0x69c   :  { %v327_v47 = vmul.f32 %v325_v45, %v305_v36 }
 0x69e   :  { %v335_v49 = vsel %vm1124_vm2, %v327_v47, %v333_v46 }
 0x69f   :  { %v338_v50 = vrot.slane %v335_v49, 4  ;;  %v412_v14 = vrot.slane %v335_v49, 6 }
 0x6a1   :  { %339 = vrot.lane.b32.xlu2 %v338_v50, %s979_s21 }
 0x6fb   :  { %v340_v51 = vpop.permute.xlu2 %339 }
 0x6fc   :  { %814 = vmatmul.msk.f32.vlgmr.msrb.gmra.mxu1 %vm111_vm7, %v340_v51 }
 0x779   :  { %v360_v52 = vpop.f32.mrf.mxu1 }
 0x77a   :  { %v364_v53 = vrot.slane %v360_v52, 2 }
 0x77c   :  { %v366_v54 = vadd.f32 %v364_v53, %v1086_v20 }
 0x77e   :  { %864 = vtanh.f32 %v366_v54  ;;  %v815_v56 = vmul.f32 -1.442695, %v366_v54 }
 0x780   :  { %866 = vpow2.f32 %v815_v56 }
 0x784   :  { %v865_v55 = vpop.eup %864 }
 0x785   :  { %392 = vrot.lane.b32.xlu0 %v865_v55, %s979_s21 }
 0x786   :  { %v867_v57 = vpop.eup %866 }
 0x787   :  { %v370_v58 = vadd.f32 1.0, %v867_v57 }
 0x789   :  { %868 = vrcp.f32 %v370_v58  ;;  %v382_v0 = vand.u32 2147483648, %v370_v58  ;;  %vm376_vm4 = vweird.f32 %v370_v58  ;;  %v380_v1 = vand.u32 2147483647, %v370_v58 }
 0x78b   :  { %v383_v2 = vor.u32 1.1754944e-38, %v382_v0  ;;  %vm381_vm6 = vcmp.eq.f32.partialorder %v380_v1, 8.507059e+37 }
 0x78f   :  { %v869_v59 = vpop.eup %868 }
 0x790   :  { %v372_v60 = vmul.f32 %v869_v59, %v370_v58  ;;  %vm377_vm3 = vweird.f32 %v869_v59 }
 0x791   :  { %vm378_vm5 = vmor %vm376_vm4, %vm377_vm3 }
 0x792   :  { %v373_v61 = vsub.f32 1.0, %v372_v60 }
 0x794   :  { %v374_v62 = vmul.f32 %v869_v59, %v373_v61 }
 0x796   :  { %v375_v63 = vadd.f32 %v869_v59, %v374_v62 }
 0x798   :  { %v379_v20 = vsel %vm378_vm5, %v869_v59, %v375_v63 }
 0x799   :  { %v384_v4 = vsel %vm381_vm6, %v383_v2, %v379_v20 }
 0x79a   :  { %v390_v8 = vmul.f32 %v388_v7, %v384_v4 }
 0x7f7   :  { %v393_v3 = vpop.permute.xlu0 %392 }
 0x7f8   :  { %v395_v5 = vmul.f32 %v393_v3, %v384_v4 }
 0x7fa   :  { %397 = vrot.lane.b32.xlu1 %v395_v5, %s980_s4 }
 0x86c   :  { %v398_v9 = vpop.permute.xlu1 %397 }
 0x86d   :  { %v400_v10 = vadd.f32 %v398_v9, %v390_v8 }
 0x86f   :  { %870 = vtanh.f32 %v400_v10  ;;  %v415_v42 = vsel %vm1138_vm8, %v400_v10, %v388_v7 }
 0x870   :  { %v464_v43 = vrot.slane %v415_v42, 6 }
 0x875   :  { %v871_v11 = vpop.eup %870 }
 0x876   :  { %403 = vrot.lane.b32.xlu2 %v871_v11, %s979_s21 }
 0x8d0   :  { %v404_v13 = vpop.permute.xlu2 %403 }
 0x8d1   :  { %v406_v15 = vmul.f32 %v404_v13, %v384_v4 }
 0x8d3   :  { %v414_v18 = vsel %vm1138_vm8, %v406_v15, %v412_v14  ;;  %v563_v14 = vstv %s562_s11 }
 0x8d4   :  { %v417_v19 = vrot.slane %v414_v18, 6  ;;  %vm1173_vm2 = vcmp.eq.s32.totalorder %v563_v14, 1 }
 0x8d6   :  { %418 = vrot.lane.b32.xlu0 %v417_v19, %s979_s21 }
 0x948   :  { %v419_v22 = vpop.permute.xlu0 %418 }
 0x949   :  { %817 = vmatmul.msk.f32.vlgmr.msrb.gmra.mxu2 %vm111_vm7, %v419_v22 }
 0x9cc   :  { %v439_v25 = vpop.f32.mrf.mxu2 }
 0x9cd   :  { %v442_v26 = vadd.f32 %v439_v25, %v1151_v24 }
 0x9cf   :  { %872 = vtanh.f32 %v442_v26  ;;  %v818_v28 = vmul.f32 -1.442695, %v442_v26 }
 0x9d1   :  { %874 = vpow2.f32 %v818_v28 }
 0x9d5   :  { %v873_v27 = vpop.eup %872 }
 0x9d6   :  { %468 = vrot.lane.b32.xlu1 %v873_v27, %s979_s21 }
 0x9d7   :  { %v875_v29 = vpop.eup %874 }
 0x9d8   :  { %v446_v30 = vadd.f32 1.0, %v875_v29 }
 0x9da   :  { %876 = vrcp.f32 %v446_v30  ;;  %v458_v17 = vand.u32 2147483648, %v446_v30  ;;  %vm452_vm9 = vweird.f32 %v446_v30  ;;  %v456_v36 = vand.u32 2147483647, %v446_v30 }
 0x9dc   :  { %v459_v38 = vor.u32 1.1754944e-38, %v458_v17  ;;  %vm457_vm11 = vcmp.eq.f32.partialorder %v456_v36, 8.507059e+37 }
 0x9e0   :  { %v877_v31 = vpop.eup %876 }
 0x9e1   :  { %v448_v32 = vmul.f32 %v877_v31, %v446_v30  ;;  %vm453_vm1 = vweird.f32 %v877_v31 }
 0x9e2   :  { %vm454_vm10 = vmor %vm452_vm9, %vm453_vm1 }
 0x9e3   :  { %v449_v33 = vsub.f32 1.0, %v448_v32 }
 0x9e5   :  { %v450_v34 = vmul.f32 %v877_v31, %v449_v33 }
 0x9e7   :  { %v451_v35 = vadd.f32 %v877_v31, %v450_v34 }
 0x9e9   :  { %v455_v37 = vsel %vm454_vm10, %v877_v31, %v451_v35 }
 0x9ea   :  { %v460_v40 = vsel %vm457_vm11, %v459_v38, %v455_v37 }
 0x9eb   :  { %v466_v44 = vmul.f32 %v464_v43, %v460_v40 }
 0xa48   :  { %v469_v39 = vpop.permute.xlu1 %468 }
 0xa49   :  { %v471_v41 = vmul.f32 %v469_v39, %v460_v40 }
 0xa4b   :  { %473 = vrot.lane.b32.xlu2 %v471_v41, %s980_s4 }
 0xaa5   :  { %v474_v45 = vpop.permute.xlu2 %473 }
 0xaa6   :  { %v476_v46 = vadd.f32 %v474_v45, %v466_v44 }
 0xaa8   :  { %878 = vtanh.f32 %v476_v46  ;;  %v490_v8 = vsel %vm1159_vm12, %v476_v46, %v464_v43 }
 0xaa9   :  { %v541_v9 = vrot.slane %v490_v8, 6 }
 0xaae   :  { %v879_v47 = vpop.eup %878 }
 0xaaf   :  { %479 = vrot.lane.b32.xlu0 %v879_v47, %s979_s21 }
 0xb21   :  { %v480_v49 = vpop.permute.xlu0 %479 }
 0xb22   :  { %v482_v50 = vmul.f32 %v480_v49, %v460_v40  ;;  %v642_v49 = vstv %s641_s2 }
 0xb23   :  { %vm1187_vm8 = vcmp.eq.s32.totalorder %v642_v49, 1 }
 0xb24   :  { %v489_v52 = vsel %vm1159_vm12, %v482_v50, %v417_v19  ;;  %v727_v19 = vld [vmem:[%s1229_s5 + $0x8] sm:$0xff] }
 0xb25   :  { %492 = vrot.lane.b32.xlu1 %v489_v52, %s979_s21  ;;  %v565_v16 = vrot.slane %v489_v52, 6 }
 0xb97   :  { %v493_v53 = vpop.permute.xlu1 %492 }
 0xb98   :  { %820 = vmatmul.msk.f32.vlgmr.msrb.gmra.mxu3 %vm111_vm7, %v493_v53 }
 0xc1b   :  { %v513_v54 = vpop.f32.mrf.mxu3 }
 0xc1c   :  { %v517_v55 = vrot.slane %v513_v54, 6 }
 0xc1e   :  { %v519_v56 = vadd.f32 %v517_v55, %v1151_v24 }
 0xc20   :  { %880 = vtanh.f32 %v519_v56  ;;  %v821_v58 = vmul.f32 -1.442695, %v519_v56 }
 0xc22   :  { %882 = vpow2.f32 %v821_v58 }
 0xc26   :  { %v881_v57 = vpop.eup %880 }
 0xc27   :  { %545 = vrot.lane.b32.xlu2 %v881_v57, %s979_s21 }
 0xc28   :  { %v883_v59 = vpop.eup %882 }
 0xc29   :  { %v523_v60 = vadd.f32 1.0, %v883_v59 }
 0xc2b   :  { %884 = vrcp.f32 %v523_v60  ;;  %v535_v20 = vand.u32 2147483648, %v523_v60  ;;  %vm529_vm14 = vweird.f32 %v523_v60  ;;  %v533_v2 = vand.u32 2147483647, %v523_v60 }
 0xc2d   :  { %v536_v4 = vor.u32 1.1754944e-38, %v535_v20  ;;  %vm534_vm0 = vcmp.eq.f32.partialorder %v533_v2, 8.507059e+37 }
 0xc31   :  { %v885_v61 = vpop.eup %884 }
 0xc32   :  { %v525_v62 = vmul.f32 %v885_v61, %v523_v60  ;;  %vm530_vm13 = vweird.f32 %v885_v61 }
 0xc33   :  { %vm531_vm15 = vmor %vm529_vm14, %vm530_vm13  ;;  %vm760_vm13 = vcmask 17408  }
 0xc34   :  { %v526_v63 = vsub.f32 1.0, %v525_v62 }
 0xc36   :  { %v527_v0 = vmul.f32 %v885_v61, %v526_v63 }
 0xc38   :  { %v528_v1 = vadd.f32 %v885_v61, %v527_v0 }
 0xc3a   :  { %v532_v3 = vsel %vm531_vm15, %v885_v61, %v528_v1 }
 0xc3b   :  { %v537_v6 = vsel %vm534_vm0, %v536_v4, %v532_v3 }
 0xc3c   :  { %v543_v10 = vmul.f32 %v541_v9, %v537_v6 }
 0xc81   :  { %v546_v5 = vpop.permute.xlu2 %545 }
 0xc82   :  { %v548_v7 = vmul.f32 %v546_v5, %v537_v6 }
 0xc84   :  { %550 = vrot.lane.b32.xlu0 %v548_v7, %s980_s4 }
 0xcf6   :  { %v551_v11 = vpop.permute.xlu0 %550 }
 0xcf7   :  { %v553_v12 = vadd.f32 %v551_v11, %v543_v10 }
 0xcf9   :  { %886 = vtanh.f32 %v553_v12  ;;  %v568_v43 = vsel %vm1173_vm2, %v553_v12, %v541_v9 }
 0xcfa   :  { %v620_v44 = vrot.slane %v568_v43, 6 }
 0xcff   :  { %v887_v13 = vpop.eup %886 }
 0xd00   :  { %556 = vrot.lane.b32.xlu1 %v887_v13, %s979_s21 }
 0xd72   :  { %v557_v15 = vpop.permute.xlu1 %556 }
 0xd73   :  { %v559_v18 = vmul.f32 %v557_v15, %v537_v6 }
 0xd75   :  { %v567_v21 = vsel %vm1173_vm2, %v559_v18, %v565_v16  ;;  %v729_v16 = vld [vmem:[%s1229_s5 + $0x18] sm:$0xff]  ;;  %v728_v18 = vld [vmem:[%s1229_s5 + $0x10] sm:$0xff] }
 0xd76   :  { %v570_v22 = vrot.slane %v567_v21, 2  ;;  %v644_v51 = vrot.slane %v567_v21, 6  ;;  %752 = vmatpush.msra.mxu3 %v729_v16  ;;  %v726_v21 = vld [vmem:[%s1229_s5] sm:$0xff]  ;;  %s981_s5 = smov [#allocation7]  }
 0xd78   :  { %571 = vrot.lane.b32.xlu2 %v570_v22, %s979_s21  ;;  %753 = vmatpush.msra.mxu3 %v728_v18  ;;  %v721_v22 = vstv %s720_s20 }
 0xd79   :  { %vm722_vm12 = vcmp.eq.s32.totalorder %v721_v22, 1 }
 0xd7a   :  { %754 = vmatpush.msra.mxu3 %v727_v19 }
 0xd7c   :  { %755 = vmatpush.msra.mxu3 %v726_v21 }
 0xdd2   :  { %v572_v23 = vpop.permute.xlu2 %571 }
 0xdd3   :  { %823 = vmatmul.msk.f32.vlgmr.msra.gmra.mxu1 %vm111_vm7, %v572_v23 }
 0xe50   :  { %v592_v25 = vpop.f32.mrf.mxu1 }
 0xe51   :  { %v596_v26 = vrot.slane %v592_v25, 4 }
 0xe53   :  { %v598_v27 = vadd.f32 %v596_v26, %v1151_v24 }
 0xe55   :  { %888 = vtanh.f32 %v598_v27  ;;  %v824_v29 = vmul.f32 -1.442695, %v598_v27 }
 0xe57   :  { %890 = vpow2.f32 %v824_v29 }
 0xe5b   :  { %v889_v28 = vpop.eup %888 }
 0xe5c   :  { %624 = vrot.lane.b32.xlu0 %v889_v28, %s979_s21 }
 0xe5d   :  { %v891_v30 = vpop.eup %890 }
 0xe5e   :  { %v602_v31 = vadd.f32 1.0, %v891_v30  ;;  %v839_v30 = vld [vmem:[%s1230_s6] ss:$0 sm:$0xff]  ;;  %s791_s6 = sshll.u32 %s981_s5, 4  ;;  %s792_s6 = int_to_ptr.vmem [resolvable:$true] %s791_s6 }
 0xe60   :  { %892 = vrcp.f32 %v602_v31  ;;  %v614_v36 = vand.u32 2147483648, %v602_v31  ;;  %vm608_vm4 = vweird.f32 %v602_v31  ;;  %v612_v37 = vand.u32 2147483647, %v602_v31 }
 0xe62   :  { %v615_v39 = vor.u32 1.1754944e-38, %v614_v36  ;;  %vm613_vm6 = vcmp.eq.f32.partialorder %v612_v37, 8.507059e+37 }
 0xe66   :  { %v893_v32 = vpop.eup %892 }
 0xe67   :  { %v604_v33 = vmul.f32 %v893_v32, %v602_v31  ;;  %vm609_vm3 = vweird.f32 %v893_v32 }
 0xe68   :  { %vm610_vm5 = vmor %vm608_vm4, %vm609_vm3 }
 0xe69   :  { %v605_v34 = vsub.f32 1.0, %v604_v33 }
 0xe6b   :  { %v606_v35 = vmul.f32 %v893_v32, %v605_v34 }
 0xe6d   :  { %v607_v17 = vadd.f32 %v893_v32, %v606_v35 }
 0xe6f   :  { %v611_v38 = vsel %vm610_vm5, %v893_v32, %v607_v17 }
 0xe70   :  { %v616_v41 = vsel %vm613_vm6, %v615_v39, %v611_v38 }
 0xe71   :  { %v622_v45 = vmul.f32 %v620_v44, %v616_v41 }
 0xece   :  { %v625_v40 = vpop.permute.xlu0 %624 }
 0xecf   :  { %v627_v42 = vmul.f32 %v625_v40, %v616_v41 }
 0xed1   :  { %629 = vrot.lane.b32.xlu1 %v627_v42, %s980_s4 }
 0xf43   :  { %v630_v46 = vpop.permute.xlu1 %629 }
 0xf44   :  { %v632_v47 = vadd.f32 %v630_v46, %v622_v45 }
 0xf46   :  { %894 = vtanh.f32 %v632_v47  ;;  %v647_v10 = vsel %vm1187_vm8, %v632_v47, %v620_v44 }
 0xf47   :  { %v699_v11 = vrot.slane %v647_v10, 6 }
 0xf4c   :  { %v895_v48 = vpop.eup %894 }
 0xf4d   :  { %635 = vrot.lane.b32.xlu2 %v895_v48, %s979_s21 }
 0xfa7   :  { %v636_v50 = vpop.permute.xlu2 %635 }
 0xfa8   :  { %v638_v52 = vmul.f32 %v636_v50, %v616_v41 }
 0xfaa   :  { %v646_v54 = vsel %vm1187_vm8, %v638_v52, %v644_v51 }
 0xfab   :  { %v649_v55 = vrot.slane %v646_v54, 4  ;;  %v723_v25 = vrot.slane %v646_v54, 6 }
 0xfad   :  { %650 = vrot.lane.b32.xlu0 %v649_v55, %s979_s21 }
0x101f   :  { %v651_v56 = vpop.permute.xlu0 %650 }
0x1020   :  { %826 = vmatmul.msk.f32.vlgmr.msra.gmra.mxu2 %vm111_vm7, %v651_v56 }
0x10a3   :  { %v671_v57 = vpop.f32.mrf.mxu2 }
0x10a4   :  { %v675_v58 = vrot.slane %v671_v57, 2 }
0x10a6   :  { %v677_v59 = vadd.f32 %v675_v58, %v1151_v24 }
0x10a8   :  { %896 = vtanh.f32 %v677_v59  ;;  %v827_v61 = vmul.f32 -1.442695, %v677_v59 }
0x10aa   :  { %898 = vpow2.f32 %v827_v61 }
0x10ae   :  { %v897_v60 = vpop.eup %896 }
0x10af   :  { %703 = vrot.lane.b32.xlu1 %v897_v60, %s979_s21 }
0x10b0   :  { %v899_v62 = vpop.eup %898 }
0x10b1   :  { %v681_v63 = vadd.f32 1.0, %v899_v62 }
0x10b3   :  { %900 = vrcp.f32 %v681_v63  ;;  %v693_v4 = vand.u32 2147483648, %v681_v63  ;;  %vm687_vm9 = vweird.f32 %v681_v63  ;;  %v691_v5 = vand.u32 2147483647, %v681_v63 }
0x10b5   :  { %v694_v6 = vor.u32 1.1754944e-38, %v693_v4  ;;  %vm692_vm11 = vcmp.eq.f32.partialorder %v691_v5, 8.507059e+37 }
0x10b9   :  { %v901_v0 = vpop.eup %900 }
0x10ba   :  { %v683_v1 = vmul.f32 %v901_v0, %v681_v63  ;;  %vm688_vm1 = vweird.f32 %v901_v0 }
0x10bb   :  { %vm689_vm10 = vmor %vm687_vm9, %vm688_vm1 }
0x10bc   :  { %v684_v20 = vsub.f32 1.0, %v683_v1 }
0x10be   :  { %v685_v2 = vmul.f32 %v901_v0, %v684_v20 }
0x10c0   :  { %v686_v3 = vadd.f32 %v901_v0, %v685_v2 }
0x10c2   :  { %v690_v24 = vsel %vm689_vm10, %v901_v0, %v686_v3 }
0x10c3   :  { %v695_v8 = vsel %vm692_vm11, %v694_v6, %v690_v24 }
0x10c4   :  { %v701_v12 = vmul.f32 %v699_v11, %v695_v8 }
0x1121   :  { %v704_v7 = vpop.permute.xlu1 %703 }
0x1122   :  { %v706_v9 = vmul.f32 %v704_v7, %v695_v8 }
0x1124   :  { %708 = vrot.lane.b32.xlu2 %v706_v9, %s980_s4 }
0x117e   :  { %v709_v13 = vpop.permute.xlu2 %708 }
0x117f   :  { %v711_v14 = vadd.f32 %v709_v13, %v701_v12 }
0x1181   :  { %902 = vtanh.f32 %v711_v14 }
0x1187   :  { %v903_v15 = vpop.eup %902 }
0x1188   :  { %714 = vrot.lane.b32.xlu0 %v903_v15, %s979_s21 }
0x11fa   :  { %v715_v23 = vpop.permute.xlu0 %714 }
0x11fb   :  { %v717_v26 = vmul.f32 %v715_v23, %v695_v8 }
0x11fd   :  { %v725_v27 = vsel %vm722_vm12, %v717_v26, %v723_v25 }
0x11fe   :  { %v735_v28 = vrot.slane %v725_v27, 6 }
0x1200   :  { %736 = vrot.lane.b32.xlu1 %v735_v28, %s979_s21 }
0x1272   :  { %v737_v29 = vpop.permute.xlu1 %736 }
0x1273   :  { %829 = vmatmul.msk.f32.vlgmr.msra.gmra.mxu3 %vm111_vm7, %v737_v29 }
0x12f6   :  { %v757_v31 = vpop.f32.mrf.mxu3 }
0x12f7   :  { %v758_v32 = vadd.f32 %v839_v30, %v757_v31 }
0x12f9   :  { %v761_v33 = vsel %vm760_vm13, %v758_v32, -inf }
0x12fa   :  { %762 = vmax.xlane.f32.xlu2 %v761_v33 }
0x136d   :  { %v763_v34 = vpop.xlane.xlu2 %762 }
0x136e   :  { %v764_v35 = vsub.f32 %v758_v32, %v763_v34 }
0x1370   :  { %v765_v17 = vmul.f32 1.442695, %v764_v35 }
0x1372   :  { %904 = vpow2.f32 %v765_v17 }
0x1378   :  { %v905_v36 = vpop.eup %904 }
0x1379   :  { %v767_v37 = vsel %vm760_vm13, %v905_v36, 0.0 }
0x137a   :  { %768 = vadd.xlane.f32.xlu0 %v767_v37 }
0x13ed   :  { %v769_v38 = vpop.xlane.xlu0 %768 }
0x13ee   :  { %906 = vrcp.f32 %v769_v38  ;;  %v781_v42 = vand.u32 2147483648, %v769_v38  ;;  %v779_v44 = vand.u32 2147483647, %v769_v38  ;;  %vm775_vm14 = vweird.f32 %v769_v38 }
0x13f0   :  { %v782_v46 = vor.u32 1.1754944e-38, %v781_v42  ;;  %vm780_vm0 = vcmp.eq.f32.partialorder %v779_v44, 8.507059e+37 }
0x13f4   :  { %v907_v39 = vpop.eup %906 }
0x13f5   :  { %v771_v40 = vmul.f32 %v907_v39, %v769_v38  ;;  %vm776_vm7 = vweird.f32 %v907_v39 }
0x13f6   :  { %vm777_vm15 = vmor %vm775_vm14, %vm776_vm7 }
0x13f7   :  { %v772_v41 = vsub.f32 1.0, %v771_v40 }
0x13f9   :  { %v773_v43 = vmul.f32 %v907_v39, %v772_v41 }
0x13fb   :  { %v774_v45 = vadd.f32 %v907_v39, %v773_v43 }
0x13fd   :  { %v778_v47 = vsel %vm777_vm15, %v907_v39, %v774_v45 }
0x13fe   :  { %v783_v48 = vsel %vm780_vm0, %v782_v46, %v778_v47 }
0x13ff   :  { %v784_v49 = vmul.f32 %v905_v36, %v783_v48 }
0x1401   :  { %785 = vst.msk [vmem:[#allocation7] sm:$0x3] %vm760_vm13, %v784_v49 }
0x1402   :  { %796 = dma.vmem_to_hbm [thread:$0]  %s792_s6, 32, %s794_s24, [#allocation4]  }
0x1403   :  { %972 = dma.done.wait [#allocation4], 32  }
0x1404   :  { %973 = vsyncadd [#allocation4], 4294967264 }
0x1405   :  { %801 = vsyncpa [#allocation3], 1 }
0x1406   :  { %802 = vsyncpa [#allocation4], 1 }
0x1407   :  { %803 = vsyncpa [#allocation5], 1 }

</bundles_post_ra>
